<compile_context>
chip_gen: v7x
topology: tpu7x:2x2x1
jax: 0.10.0
libtpu: 0.0.40
codegen_flags: <defaults>
</compile_context>

<pallas_src>
import functools

import jax
import jax.numpy as jnp
from jax.experimental import pallas as pl
from jax.experimental.pallas import tpu as pltpu

EPS = 1e-5


# ----------------------------- small helpers --------------------------------
def _round_up(n, m):
    return ((n + m - 1) // m) * m


def _pad_axis(a, target, axis, value=0.0):
    pad = target - a.shape[axis]
    if pad == 0:
        return a
    widths = [(0, 0)] * a.ndim
    widths[axis] = (0, pad)
    return jnp.pad(a, widths, constant_values=value)


def _col_tile(padded):
    # 256-granule column tiles where possible (fills the 2x256x256 MXU on v6e/v7x),
    # otherwise 128 (v5e granule / minimum lane-dense store width).
    if padded >= 256 and padded % 256 == 0:
        return 256
    return 128


def _nbytes(shape, dtype):
    n = 1
    for s in shape:
        n *= int(s)
    return n * jnp.dtype(dtype).itemsize


def _vmem_limit(block_bytes):
    # Double-buffered pipeline (x2) + spill / internal headroom; capped below v7x's
    # 64 MiB physical VMEM so the same config runs on all three generations.
    # TODO(synk): when 2*block_bytes no longer fits here, tile the batch dim and switch
    # BN to a two-stage accumulate-then-normalize grid instead of whole-batch blocks.
    want = 2 * block_bytes + (4 << 20)
    return max(16 << 20, min(want, 60 << 20))


def _bn_train(h, gamma, beta, n_real):
    # Training-mode BatchNorm1d over the REAL batch rows only (biased variance,
    # two-pass / centered for numerical safety); affine folded into one FMA.
    hr = h[:n_real]
    mean = jnp.mean(hr, axis=0, keepdims=True)
    var = jnp.mean((hr - mean) ** 2, axis=0, keepdims=True)
    scale = gamma * jax.lax.rsqrt(var + EPS)
    shift = beta - mean * scale
    return h * scale + shift


# ------------------------------- kernels ------------------------------------
def fc1_bn_relu_kernel(x_ref, w1_ref, g1_ref, be1_ref, h1_ref, *, n_real):
    # One planes-column tile:  h1 = relu(bn1(x @ w1_tile))
    h = jnp.dot(x_ref[...], w1_ref[...], preferred_element_type=jnp.float32)
    h = jnp.maximum(_bn_train(h, g1_ref[...], be1_ref[...], n_real), 0.0)
    h1_ref[...] = h.astype(h1_ref.dtype)


def fc2_shortcut_kernel(h1_ref, x_ref, w2_ref, ws_ref,
                        g2_ref, be2_ref, gs_ref, bes_ref, o_ref, *, n_real):
    # One out-column tile:  out = relu(bn2(h1 @ w2_tile) + bn_s(x @ ws_tile))
    h2 = jnp.dot(h1_ref[...], w2_ref[...], preferred_element_type=jnp.float32)
    h2 = _bn_train(h2, g2_ref[...], be2_ref[...], n_real)
    sc = jnp.dot(x_ref[...], ws_ref[...], preferred_element_type=jnp.float32)
    sc = _bn_train(sc, gs_ref[...], bes_ref[...], n_real)
    o_ref[...] = jnp.maximum(h2 + sc, 0.0).astype(o_ref.dtype)


# ------------------------------- wrapper -------------------------------------
def res_linear(x, params, matmul_dtype=jnp.bfloat16, keep_padded=False):
    """x: [N, in_planes] float32 -> [N, out_planes] float32.

    matmul_dtype: dtype of MXU operands (bf16 default); None keeps f32 operands.
    Accumulation and all BatchNorm / elementwise math are f32.
    keep_padded=True returns the padded [n_pad, out_pad] array (skips the slice copy).
    """
    N, in_planes = x.shape
    planes = params["w1"].shape[1]
    out_planes = params["w2"].shape[1]

    md = x.dtype if matmul_dtype is None else matmul_dtype
    itemsize = jnp.dtype(md).itemsize

    in_pad = _round_up(in_planes, 128)
    planes_pad = _round_up(planes, 128)
    out_pad = _round_up(out_planes, 128)

    # Pad batch to the operand sublane pack so x / h1 loads are unmasked.
    sub = 16 if itemsize == 2 else 8
    n_pad = _round_up(N, sub)

    tile_p = _col_tile(planes_pad)
    tile_o = _col_tile(out_pad)

    # Layout plumbing: cast to MXU dtype BEFORE padding; no concat (w1/ws separate).
    # Padded columns stay exactly zero through BN (gamma padded with 1, beta with 0).
    x_p = _pad_axis(_pad_axis(x.astype(md), in_pad, 1), n_pad, 0)
    w1_p = _pad_axis(_pad_axis(params["w1"].astype(md), in_pad, 0), planes_pad, 1)
    w2_p = _pad_axis(_pad_axis(params["w2"].astype(md), planes_pad, 0), out_pad, 1)
    ws_p = _pad_axis(_pad_axis(params["ws"].astype(md), in_pad, 0), out_pad, 1)

    g1_p = _pad_axis(params["g1"], planes_pad, 1, 1.0)
    be1_p = _pad_axis(params["be1"], planes_pad, 1, 0.0)
    g2_p = _pad_axis(params["g2"], out_pad, 1, 1.0)
    be2_p = _pad_axis(params["be2"], out_pad, 1, 0.0)
    gs_p = _pad_axis(params["gs"], out_pad, 1, 1.0)
    bes_p = _pad_axis(params["bes"], out_pad, 1, 0.0)

    # ---- kernel 1: h1 = relu(bn1(x @ w1)), grid over planes column tiles ----
    blk1_bytes = (_nbytes((n_pad, in_pad), md) + _nbytes((in_pad, tile_p), md)
                  + 2 * _nbytes((1, tile_p), jnp.float32)
                  + _nbytes((n_pad, tile_p), md))
    cost1 = pl.CostEstimate(
        flops=2 * n_pad * in_pad * planes_pad,
        transcendentals=planes_pad,
        bytes_accessed=(_nbytes((n_pad, in_pad), md) + _nbytes((in_pad, planes_pad), md)
                        + 2 * _nbytes((1, planes_pad), jnp.float32)
                        + _nbytes((n_pad, planes_pad), md)))
    h1 = pl.pallas_call(
        functools.partial(fc1_bn_relu_kernel, n_real=N),
        out_shape=jax.ShapeDtypeStruct((n_pad, planes_pad), md),
        grid_spec=pltpu.PrefetchScalarGridSpec(
            num_scalar_prefetch=0,
            grid=(planes_pad // tile_p,),
            in_specs=[
                pl.BlockSpec((n_pad, in_pad), lambda j: (0, 0)),     # x (resident)
                pl.BlockSpec((in_pad, tile_p), lambda j: (0, j)),    # w1 column tile
                pl.BlockSpec((1, tile_p), lambda j: (0, j)),         # gamma1
                pl.BlockSpec((1, tile_p), lambda j: (0, j)),         # beta1
            ],
            out_specs=pl.BlockSpec((n_pad, tile_p), lambda j: (0, j)),
        ),
        compiler_params=pltpu.CompilerParams(
            dimension_semantics=("parallel",),
            vmem_limit_bytes=_vmem_limit(blk1_bytes)),
        cost_estimate=cost1,
    )(x_p, w1_p, g1_p, be1_p)

    # ---- kernel 2: out = relu(bn2(h1 @ w2) + bn_s(x @ ws)), grid over out tiles ----
    blk2_bytes = (_nbytes((n_pad, planes_pad), md) + _nbytes((n_pad, in_pad), md)
                  + _nbytes((planes_pad, tile_o), md) + _nbytes((in_pad, tile_o), md)
                  + 4 * _nbytes((1, tile_o), jnp.float32)
                  + _nbytes((n_pad, tile_o), jnp.float32))
    cost2 = pl.CostEstimate(
        flops=2 * n_pad * planes_pad * out_pad + 2 * n_pad * in_pad * out_pad,
        transcendentals=2 * out_pad,
        bytes_accessed=(_nbytes((n_pad, planes_pad), md) + _nbytes((n_pad, in_pad), md)
                        + _nbytes((planes_pad, out_pad), md) + _nbytes((in_pad, out_pad), md)
                        + 4 * _nbytes((1, out_pad), jnp.float32)
                        + _nbytes((n_pad, out_pad), jnp.float32)))
    out_p = pl.pallas_call(
        functools.partial(fc2_shortcut_kernel, n_real=N),
        out_shape=jax.ShapeDtypeStruct((n_pad, out_pad), jnp.float32),
        grid_spec=pltpu.PrefetchScalarGridSpec(
            num_scalar_prefetch=0,
            grid=(out_pad // tile_o,),
            in_specs=[
                pl.BlockSpec((n_pad, planes_pad), lambda j: (0, 0)),   # h1 (resident)
                pl.BlockSpec((n_pad, in_pad), lambda j: (0, 0)),       # x  (resident)
                pl.BlockSpec((planes_pad, tile_o), lambda j: (0, j)),  # w2 column tile
                pl.BlockSpec((in_pad, tile_o), lambda j: (0, j)),      # ws column tile
                pl.BlockSpec((1, tile_o), lambda j: (0, j)),           # gamma2
                pl.BlockSpec((1, tile_o), lambda j: (0, j)),           # beta2
                pl.BlockSpec((1, tile_o), lambda j: (0, j)),           # gamma_s
                pl.BlockSpec((1, tile_o), lambda j: (0, j)),           # beta_s
            ],
            out_specs=pl.BlockSpec((n_pad, tile_o), lambda j: (0, j)),
        ),
        compiler_params=pltpu.CompilerParams(
            dimension_semantics=("parallel",),
            vmem_limit_bytes=_vmem_limit(blk2_bytes)),
        cost_estimate=cost2,
    )(h1, x_p, w2_p, ws_p, g2_p, be2_p, gs_p, bes_p)

    if keep_padded:
        return out_p
    return out_p[:N, :out_planes]


# ------------------------- params & pure-JAX reference -----------------------
def init_params(key, in_planes, planes, expansion):
    out_planes = expansion * planes
    k1, k2, k3, kb1, kb2 = jax.random.split(key, 5)
    # Linear weights stored transposed ([in, out]) relative to PyTorch's [out, in].
    # b1/b2 kept for fidelity to nn.Linear; they have no effect on the forward output
    # (training-mode BN subtracts the batch mean, cancelling any per-feature constant).
    return {
        "w1": jax.random.normal(k1, (in_planes, planes), jnp.float32) * 0.05,
        "b1": jax.random.normal(kb1, (1, planes), jnp.float32) * 0.05,
        "g1": jnp.ones((1, planes), jnp.float32),
        "be1": jnp.zeros((1, planes), jnp.float32),
        "w2": jax.random.normal(k2, (planes, out_planes), jnp.float32) * 0.05,
        "b2": jax.random.normal(kb2, (1, out_planes), jnp.float32) * 0.05,
        "g2": jnp.ones((1, out_planes), jnp.float32),
        "be2": jnp.zeros((1, out_planes), jnp.float32),
        "ws": jax.random.normal(k3, (in_planes, out_planes), jnp.float32) * 0.05,
        "gs": jnp.ones((1, out_planes), jnp.float32),
        "bes": jnp.zeros((1, out_planes), jnp.float32),
    }


def res_linear_ref(x, p):
    # Pure-JAX mirror of the PyTorch forward (training-mode BatchNorm1d, biases included).
    def bn(h, g, b):
        m = jnp.mean(h, axis=0, keepdims=True)
        v = jnp.mean((h - m) ** 2, axis=0, keepdims=True)
        return (h - m) / jnp.sqrt(v + EPS) * g + b
    h1 = jnp.maximum(bn(x @ p["w1"] + p["b1"], p["g1"], p["be1"]), 0.0)
    h2 = bn(h1 @ p["w2"] + p["b2"], p["g2"], p["be2"])
    sc = bn(x @ p["ws"], p["gs"], p["bes"])
    return jnp.maximum(h2 + sc, 0.0)


if __name__ == "__main__":
    key = jax.random.PRNGKey(0)
    kx, kp = jax.random.split(key)

    N, in_planes, planes, expansion = 8, 32, 32, 2
    x = jax.random.normal(kx, (N, in_planes), jnp.float32)
    params = init_params(kp, in_planes, planes, expansion)

    ref = res_linear_ref(x, params)

    # f32-operand path: tight check of the structure (padding, column-tiled grids,
    # two-pass BN variance, folded affine, dropped pre-BN biases, sublane-padded batch).
    out_f32 = jax.block_until_ready(res_linear(x, params, matmul_dtype=None))
    assert out_f32.shape == (N, expansion * planes)
    assert jnp.allclose(out_f32, ref, atol=2e-4, rtol=2e-4), "f32 kernel mismatch vs reference"

    # Default performance path: bf16 MXU operands, f32 accumulation + f32 BN math.
    out = jax.block_until_ready(res_linear(x, params))
    assert out.shape == (N, expansion * planes)
    assert jnp.allclose(out, ref, atol=5e-2, rtol=5e-2), "bf16 kernel mismatch vs reference"

    print("KERNEL_OK")
</pallas_src>

<mosaic_0001>
module attributes {stable_mosaic.version = 11 : i64} {
  func.func @fc1_bn_relu_kernel(%arg0: i32, %arg1: memref<8x128xf32, #tpu.memory_space<vmem>>, %arg2: memref<128x128xf32, #tpu.memory_space<vmem>>, %arg3: memref<1x128xf32, #tpu.memory_space<vmem>>, %arg4: memref<1x128xf32, #tpu.memory_space<vmem>>, %arg5: memref<8x128xf32, #tpu.memory_space<vmem>>) attributes {dimension_semantics = [#tpu.dimension_semantics<parallel>], iteration_bounds = array<i64: 1>, scalar_prefetch = 0 : i64, scratch_operands = 0 : i64, tpu.core_type = #tpu.core_type<tc>, window_params = [{pipeline_mode = #tpu.pipeline_mode<synchronous>, transform_indices = @transform_0, window_bounds = array<i64: 8, 128>}, {transform_indices = @transform_1, window_bounds = array<i64: 128, 128>}, {transform_indices = @transform_2, window_bounds = array<i64: 1, 128>}, {transform_indices = @transform_3, window_bounds = array<i64: 1, 128>}, {transform_indices = @transform_4, window_bounds = array<i64: 8, 128>}]} {
    %c0 = arith.constant 0 : index
    %c0_0 = arith.constant 0 : index
    %0 = vector.load %arg1[%c0, %c0_0] : memref<8x128xf32, #tpu.memory_space<vmem>>, vector<8x128xf32>
    %c0_1 = arith.constant 0 : index
    %c0_2 = arith.constant 0 : index
    %1 = vector.load %arg2[%c0_1, %c0_2] : memref<128x128xf32, #tpu.memory_space<vmem>>, vector<128x128xf32>
    %cst = arith.constant dense<0.000000e+00> : vector<8x128xf32>
    %2 = tpu.matmul %0, %1, %cst {dimension_numbers = #tpu.dot_dimension_numbers<[1], [0], [0], [1], [0, 0, 1, 1], [], []>} : vector<8x128xf32>, vector<128x128xf32>, vector<8x128xf32> -> vector<8x128xf32>
    %c0_3 = arith.constant 0 : index
    %c0_4 = arith.constant 0 : index
    %3 = vector.load %arg3[%c0_3, %c0_4] : memref<1x128xf32, #tpu.memory_space<vmem>>, vector<1x128xf32>
    %c0_5 = arith.constant 0 : index
    %c0_6 = arith.constant 0 : index
    %4 = vector.load %arg4[%c0_5, %c0_6] : memref<1x128xf32, #tpu.memory_space<vmem>>, vector<1x128xf32>
    %cst_7 = arith.constant dense<0.000000e+00> : vector<128xf32>
    %5 = vector.multi_reduction <add>, %2, %cst_7 [0] : vector<8x128xf32> to vector<128xf32>
    %6 = vector.shape_cast %5 : vector<128xf32> to vector<1x128xf32>
    %cst_8 = arith.constant 8.000000e+00 : f32
    %7 = vector.broadcast %cst_8 : f32 to vector<1x128xf32>
    %8 = arith.divf %6, %7 : vector<1x128xf32>
    %9 = vector.broadcast %8 : vector<1x128xf32> to vector<8x128xf32>
    %10 = arith.subf %2, %9 : vector<8x128xf32>
    %11 = arith.mulf %10, %10 : vector<8x128xf32>
    %cst_9 = arith.constant dense<0.000000e+00> : vector<128xf32>
    %12 = vector.multi_reduction <add>, %11, %cst_9 [0] : vector<8x128xf32> to vector<128xf32>
    %13 = vector.shape_cast %12 : vector<128xf32> to vector<1x128xf32>
    %cst_10 = arith.constant 8.000000e+00 : f32
    %14 = vector.broadcast %cst_10 : f32 to vector<1x128xf32>
    %15 = arith.divf %13, %14 : vector<1x128xf32>
    %cst_11 = arith.constant 9.99999974E-6 : f32
    %16 = vector.broadcast %cst_11 : f32 to vector<1x128xf32>
    %17 = arith.addf %15, %16 : vector<1x128xf32>
    %18 = math.rsqrt %17 : vector<1x128xf32>
    %19 = arith.mulf %3, %18 : vector<1x128xf32>
    %20 = arith.mulf %8, %19 : vector<1x128xf32>
    %21 = arith.subf %4, %20 : vector<1x128xf32>
    %22 = vector.broadcast %19 : vector<1x128xf32> to vector<8x128xf32>
    %23 = arith.mulf %2, %22 : vector<8x128xf32>
    %24 = vector.broadcast %21 : vector<1x128xf32> to vector<8x128xf32>
    %25 = arith.addf %23, %24 : vector<8x128xf32>
    %cst_12 = arith.constant 0.000000e+00 : f32
    %26 = vector.broadcast %cst_12 : f32 to vector<8x128xf32>
    %27 = arith.maximumf %25, %26 : vector<8x128xf32>
    %c0_13 = arith.constant 0 : index
    %c0_14 = arith.constant 0 : index
    %28 = vector.load %arg5[%c0_13, %c0_14] : memref<8x128xf32, #tpu.memory_space<vmem>>, vector<8x128xf32>
    tpu.vector_store %arg5[%c0_13, %c0_14], %27 {strides = array<i32>} : memref<8x128xf32, #tpu.memory_space<vmem>>, vector<8x128xf32>,
    return
  }
  func.func @transform_0(%arg0: i32) -> (i32, i32) {
    %c0_i32 = arith.constant 0 : i32
    %c0_i32_0 = arith.constant 0 : i32
    %c0_i32_1 = arith.constant 0 : i32
    return %c0_i32, %c0_i32_0 : i32, i32
  }
  func.func @transform_1(%arg0: i32) -> (i32, i32) {
    %c0_i32 = arith.constant 0 : i32
    %c0_i32_0 = arith.constant 0 : i32
    return %c0_i32, %arg0 : i32, i32
  }
  func.func @transform_2(%arg0: i32) -> (i32, i32) {
    %c0_i32 = arith.constant 0 : i32
    %c0_i32_0 = arith.constant 0 : i32
    return %c0_i32, %arg0 : i32, i32
  }
  func.func @transform_3(%arg0: i32) -> (i32, i32) {
    %c0_i32 = arith.constant 0 : i32
    %c0_i32_0 = arith.constant 0 : i32
    return %c0_i32, %arg0 : i32, i32
  }
  func.func @transform_4(%arg0: i32) -> (i32, i32) {
    %c0_i32 = arith.constant 0 : i32
    %c0_i32_0 = arith.constant 0 : i32
    return %c0_i32, %arg0 : i32, i32
  }
}

</mosaic_0001>

<bundles_post_ra>
// kernel: tpu_custom_call.1
= control target key start
LH: loop header
LB: loop body
LE: loop exit
PB: predicated region body
PF: predicated region fallthrough
CT: control target
= control target key end

     0   :  { %9 = vsyncpa [#allocation3], 0  ;;  %s427_s0 = inlined_call_operand.hbm [shape: f32[8,128], index: 0, kind: input, shape index: {}]   ;;  %s428_s1 = inlined_call_operand.hbm [shape: f32[128,128], index: 1, kind: input, shape index: {}]   ;;  %s429_s2 = inlined_call_operand.vmem [shape: f32[1,128], index: 2, kind: input, shape index: {}]   ;;  %s430_s3 = inlined_call_operand.vmem [shape: f32[1,128], index: 3, kind: input, shape index: {}]   ;;  %s431_s4 = inlined_call_operand.hbm [shape: f32[8,128], index: 4, kind: output, shape index: {}]  }
   0x1   :  { %10 = vsyncpa [#allocation6], 0 }
   0x2   :  { %11 = vsyncpa [#allocation4], 0  ;;  %s345_s15 = smov [#allocation2]   ;;  %s346_s17 = smov [#allocation5]  }
   0x3   :  { %s18_s16 = sshll.u32 %s345_s15, 4  ;;  %s27_s18 = sshll.u32 %s346_s17, 4  ;;  %s19_s16 = int_to_ptr.vmem [resolvable:$true] %s18_s16  ;;  %s378_s18 = int_to_ptr.vmem [resolvable:$true] %s27_s18 }
   0x4   :  { %s273_s21 = scalar_lea.hbm %s427_s0, 128 }
   0x5   :  { %p274_p0 = scmp.ne.s32.totalorder %s427_s0, %s273_s21  ;;  %p277_p1 = scmp.lt.u32.totalorder %s273_s21, %s427_s0 }
   0x7   :  { %p279_p2 = pnand %p277_p1, %p274_p0 }
   0x9   :  { %282 = shalt.err (!%p279_p2)
}
   0xa   :  { %s283_s26 = scalar_lea.vmem %s19_s16, 128  ;;  %p288_p4 = scmp.lt.s32.totalorder %s19_s16, %s19_s16 }
   0xb   :  { %p284_p3 = scmp.ne.s32.totalorder %s19_s16, %s283_s26  ;;  %p289_p5 = scmp.lt.s32.totalorder %s283_s26, %s283_s26 }
   0xd   :  { %p290_p6 = por %p289_p5, %p288_p4 }
   0xf   :  { %p291_p7 = pnand %p290_p6, %p284_p3 }
  0x11   :  { %294 = shalt.err (!%p291_p7)
}
  0x12   :  { %21 = dma.hbm_to_vmem [thread:$0]  %s427_s0, 128, %s19_s16, [#allocation3]  }
  0x13   :  { %s295_s5 = scalar_lea.hbm %s428_s1, 2048 }
  0x14   :  { %p296_p8 = scmp.ne.s32.totalorder %s428_s1, %s295_s5  ;;  %p299_p9 = scmp.lt.u32.totalorder %s295_s5, %s428_s1 }
  0x16   :  { %p301_p10 = pnand %p299_p9, %p296_p8 }
  0x18   :  { %304 = shalt.err (!%p301_p10)
}
  0x19   :  { %s305_s10 = scalar_lea.vmem %s378_s18, 2048  ;;  %p310_p12 = scmp.lt.s32.totalorder %s378_s18, %s378_s18 }
  0x1a   :  { %p306_p11 = scmp.ne.s32.totalorder %s378_s18, %s305_s10  ;;  %p311_p13 = scmp.lt.s32.totalorder %s305_s10, %s305_s10 }
  0x1c   :  { %p312_p0 = por %p311_p13, %p310_p12 }
  0x1e   :  { %p313_p1 = pnand %p312_p0, %p306_p11 }
  0x20   :  { %316 = shalt.err (!%p313_p1)
}
  0x21   :  { %s347_s0 = smov 128   ;;  %s348_s11 = smov 8  }
  0x22   :  { %33 = dma.hbm_to_vmem [thread:$0]  %s428_s1, 2048, %s378_s18, [#allocation6], %s347_s0, %s347_s0, %s348_s11  }
  0x23   :  { %339 = dma.done.wait [#allocation3], 128  }
  0x24   :  { %340 = vsyncadd [#allocation3], 4294967168 }
  0x25   :  { %341 = dma.done.wait [#allocation6], 2048  }
  0x26   :  { %342 = vsyncadd [#allocation6], 4294965248  ;;  %v349_v0 = vmov 0.0|0.0   ;;  %vm350_vm0 = vmmov 0   ;;  %v351_v1 = vmov 0.0   ;;  %v45_v2 = vld [vmem:[#allocation5] sm:$0xff]  ;;  %v156_v46 = vlaneseq }
  0x27   :  { %239 = vmatprep.subr.bf16.mxu0 %v349_v0  ;;  %236 = vmatprep.mubr.msk.f32.mxu0 %vm350_vm0, %v351_v1  ;;  %v46_v3 = vld [vmem:[#allocation5 + $0x8] sm:$0xff]  ;;  %v47_v4 = vld [vmem:[#allocation5 + $0x10] sm:$0xff]  ;;  %v48_v6 = vld [vmem:[#allocation5 + $0x18] sm:$0xff]  ;;  %s352_s17 = smov [#allocation7]  }
  0x28   :  { %v240_v5 = vpack.c.bf16 %v46_v3, %v45_v2  ;;  %v243_v7 = vpack.c.bf16 %v48_v6, %v47_v4  ;;  %v49_v8 = vld [vmem:[#allocation5 + $0x20] sm:$0xff]  ;;  %v50_v9 = vld [vmem:[#allocation5 + $0x28] sm:$0xff]  ;;  %v51_v11 = vld [vmem:[#allocation5 + $0x30] sm:$0xff]  ;;  %v157_v47 = vshrl.u32 %v156_v46, 7  ;;  %s177_s18 = sshll.u32 %s352_s17, 4  ;;  %s178_s18 = int_to_ptr.vmem [resolvable:$true] %s177_s18 }
  0x29   :  { %v246_v10 = vpack.c.bf16 %v50_v9, %v49_v8  ;;  %v52_v12 = vld [vmem:[#allocation5 + $0x38] sm:$0xff]  ;;  %v53_v14 = vld [vmem:[#allocation5 + $0x40] sm:$0xff]  ;;  %v54_v15 = vld [vmem:[#allocation5 + $0x48] sm:$0xff]  ;;  %s317_s19 = scalar_lea.vmem %s178_s18, 128  ;;  %p322_p3 = scmp.lt.s32.totalorder %s178_s18, %s178_s18 }
  0x2a   :  { %241 = vmatpush3.bf16.msra.mxu0 %v240_v5  ;;  %v249_v13 = vpack.c.bf16 %v52_v12, %v51_v11  ;;  %v252_v16 = vpack.c.bf16 %v54_v15, %v53_v14  ;;  %v55_v17 = vld [vmem:[#allocation5 + $0x50] sm:$0xff]  ;;  %v56_v18 = vld [vmem:[#allocation5 + $0x58] sm:$0xff]  ;;  %v57_v20 = vld [vmem:[#allocation5 + $0x60] sm:$0xff]  ;;  %v158_v49 = vsub.s32 0, %v157_v47  ;;  %p318_p2 = scmp.ne.s32.totalorder %s178_s18, %s317_s19  ;;  %p323_p4 = scmp.lt.s32.totalorder %s317_s19, %s317_s19 }
  0x2b   :  { %242 = vmatprep.subr.bf16.mxu0 %v349_v0  ;;  %v255_v19 = vpack.c.bf16 %v56_v18, %v55_v17  ;;  %v58_v21 = vld [vmem:[#allocation5 + $0x68] sm:$0xff]  ;;  %v59_v23 = vld [vmem:[#allocation5 + $0x70] sm:$0xff]  ;;  %v60_v24 = vld [vmem:[#allocation5 + $0x78] sm:$0xff] }
  0x2c   :  { %v258_v22 = vpack.c.bf16 %v58_v21, %v57_v20  ;;  %v261_v25 = vpack.c.bf16 %v60_v24, %v59_v23  ;;  %v44_v26 = vld [vmem:[#allocation2] sm:$0xff]  ;;  %p324_p5 = por %p323_p4, %p322_p3 }
  0x2d   :  { %v131_v48 = vld [vmem:[%s429_s2] sm:$0x1] }
  0x2e   :  { %244 = vmatpush3.bf16.msra.mxu0 %v243_v7  ;;  %v132_v52 = vld [vmem:[%s430_s3] sm:$0x1]  ;;  %p325_p6 = pnand %p324_p5, %p318_p2 }
  0x2f   :  { %245 = vmatprep.subr.bf16.mxu0 %v349_v0 }
  0x32   :  { %247 = vmatpush3.bf16.msra.mxu0 %v246_v10 }
  0x33   :  { %248 = vmatprep.subr.bf16.mxu0 %v349_v0 }
  0x36   :  { %250 = vmatpush3.bf16.msra.mxu0 %v249_v13 }
  0x37   :  { %251 = vmatprep.subr.bf16.mxu0 %v349_v0 }
  0x3a   :  { %253 = vmatpush3.bf16.msra.mxu0 %v252_v16 }
  0x3b   :  { %254 = vmatprep.subr.bf16.mxu0 %v349_v0 }
  0x3e   :  { %256 = vmatpush3.bf16.msra.mxu0 %v255_v19 }
  0x3f   :  { %257 = vmatprep.subr.bf16.mxu0 %v349_v0 }
  0x42   :  { %259 = vmatpush3.bf16.msra.mxu0 %v258_v22 }
  0x43   :  { %260 = vmatprep.subr.bf16.mxu0 %v349_v0 }
  0x46   :  { %262 = vmatpush3.bf16.msra.mxu0 %v261_v25 }
  0x49   :  { %237 = vmatmul.mubr.f32.vlgmr.msra.gmra.mrb[0].mxu0 %v44_v26 }
 0x11c   :  { %v127_v27 = vpop.f32.mrb[0].mxu0 }
 0x11d   :  { %v133_v28 = vrot.slane %v127_v27, 4  ;;  %v238_v29 = vpop.f32.mrb[1].mxu0 }
 0x11f   :  { %v134_v30 = vadd.f32 %v133_v28, %v127_v27 }
 0x121   :  { %v135_v31 = vrot.slane %v134_v30, 2 }
 0x123   :  { %v136_v32 = vadd.f32 %v135_v31, %v134_v30 }
 0x125   :  { %v137_v33 = vrot.slane %v136_v32, 1 }
 0x127   :  { %v138_v34 = vadd.f32 %v137_v33, %v136_v32 }
 0x129   :  { %v140_v35 = vmul.f32 0.125, %v138_v34 }
 0x12b   :  { %v141_v36 = vsub.f32 %v127_v27, %v140_v35 }
 0x12d   :  { %v142_v37 = vmul.f32 %v141_v36, %v141_v36 }
 0x12f   :  { %v143_v38 = vrot.slane %v142_v37, 4 }
 0x131   :  { %v144_v39 = vadd.f32 %v143_v38, %v142_v37 }
 0x133   :  { %v145_v40 = vrot.slane %v144_v39, 2 }
 0x135   :  { %v146_v41 = vadd.f32 %v145_v40, %v144_v39 }
 0x137   :  { %v147_v42 = vrot.slane %v146_v41, 1 }
 0x139   :  { %v148_v43 = vadd.f32 %v147_v42, %v146_v41 }
 0x13b   :  { %v149_v44 = vmul.f32 0.125, %v148_v43 }
 0x13d   :  { %v150_v45 = vadd.f32 1e-05, %v149_v44 }
 0x13f   :  { %271 = vrsqrt.f32 %v150_v45 }
 0x149   :  { %v272_v50 = vpop.eup %271 }
 0x14a   :  { %v152_v51 = vmul.f32 %v272_v50, %v131_v48 }
 0x14c   :  { %v153_v53 = vmul.f32 %v152_v51, %v140_v35  ;;  %v159_v54 = vrot.slane %v152_v51, %v158_v49 }
 0x14e   :  { %v154_v55 = vsub.f32 %v132_v52, %v153_v53  ;;  %v161_v56 = vmul.f32 %v159_v54, %v127_v27 }
 0x150   :  { %v166_v57 = vrot.slane %v154_v55, %v158_v49 }
 0x152   :  { %v168_v58 = vadd.f32 %v166_v57, %v161_v56 }
 0x154   :  { %v169_v59 = vmax.f32 %v168_v58, 0.0 }
 0x156   :  { %170 = vst [vmem:[#allocation7] sm:$0xff] %v169_v59 }
 0x157   :  { %328 = shalt.err (!%p325_p6)
}
 0x158   :  { %s329_s20 = scalar_lea.hbm %s431_s4, 128 }
 0x159   :  { %p330_p7 = scmp.ne.s32.totalorder %s431_s4, %s329_s20  ;;  %p333_p8 = scmp.lt.u32.totalorder %s329_s20, %s431_s4 }
 0x15b   :  { %p335_p9 = pnand %p333_p8, %p330_p7 }
 0x15d   :  { %338 = shalt.err (!%p335_p9)
}
 0x15e   :  { %180 = dma.vmem_to_hbm [thread:$0]  %s178_s18, 128, %s431_s4, [#allocation4]  }
 0x15f   :  { %343 = dma.done.wait [#allocation4], 128  }
 0x160   :  { %344 = vsyncadd [#allocation4], 4294967168 }
 0x161   :  { %184 = vsyncpa [#allocation3], 1 }
 0x162   :  { %185 = vsyncpa [#allocation6], 1 }
 0x163   :  { %186 = vsyncpa [#allocation4], 1 }

</bundles_post_ra>
